<compile_context>
chip_gen: v7x
topology: tpu7x:2x2x1
jax: 0.10.0
libtpu: 0.0.40
codegen_flags: <defaults>
</compile_context>

<pallas_src>
import numpy as np
import jax
import jax.numpy as jnp
from jax import lax
from jax.experimental import pallas as pl
from jax.experimental.pallas import tpu as pltpu

_EPS = 1e-5


# ---------------- hardware / tiling helpers ----------------

def _vmem_capacity_bytes():
    """Physical VMEM capacity; conservative (v7x-safe) fallback if unknown."""
    try:
        return int(getattr(pltpu.get_tpu_info(), "vmem_capacity_bytes"))
    except Exception:
        return 64 * 1024 * 1024


def _aligned_divisors_desc(n, mult):
    """Divisors of n that are multiples of `mult`, descending (may be empty)."""
    out = []
    d = (n // mult) * mult
    while d >= mult:
        if n % d == 0:
            out.append(d)
        d -= mult
    return out


def _pick_tiling_pre_false(B, C_in, C_out, N, budget):
    """(bblk, tm) for the fused matmul+stats pass (pre=False)."""
    tm_cands = [t for t in _aligned_divisors_desc(N, 128) if t <= 2048] or [N]
    b_cands = [c for c in range(min(B, 8), 0, -1) if B % c == 0] or [1]
    small = (C_out * C_in + 2 * C_out) * 4

    def footprint(bblk, tm):
        x_blk = bblk * C_in * N * 4            # f32 input block
        g_blk = bblk * tm * N * 4              # f32 input block
        y_blk = bblk * C_out * tm * 2          # bf16 output block
        # single-buffered in-kernel temporaries (bf16 operand copies, u, yb)
        temp = (C_in * N + tm * N) * 2 + C_in * tm * 4 + C_out * tm * 4
        return 2 * (x_blk + g_blk + y_blk + small) + temp

    best = None
    for tm in tm_cands:
        for bblk in b_cands:
            if footprint(bblk, tm) > budget:
                continue
            cand = (bblk * tm, tm, bblk)
            if best is None or cand > best:
                best = cand
    if best is not None:
        return best[2], best[1]
    return 1, min(tm_cands)


def _pick_tiling_pre_true(B, C_in, C_out, N, budget):
    """(bblk, tm) shared by the pre=True stats pass and apply pass."""
    tm_cands = [t for t in _aligned_divisors_desc(N, 128) if t <= 1024] or [N]
    b_cands = [c for c in range(min(B, 8), 0, -1) if B % c == 0] or [1]
    small = C_out * C_in * 2 + 4 * C_out * 4

    def footprint(bblk, tm):
        g_blk = bblk * tm * C_in * 4           # f32 input block
        o_blk = bblk * C_out * tm * 4          # f32 output block (pass B)
        temp = tm * C_in * 2 + C_out * tm * 4  # bf16 copy of g_b + f32 yb
        return 2 * (g_blk + o_blk + small) + temp

    best = None
    for tm in tm_cands:
        for bblk in b_cands:
            if footprint(bblk, tm) > budget:
                continue
            cand = (bblk * tm, tm, bblk)
            if best is None or cand > best:
                best = cand
    if best is not None:
        return best[2], best[1]
    return 1, min(tm_cands)


def _pick_tiling_apply(R, N, budget):
    """(rblk, tn) for the purely elementwise BN+ReLU pass over (R, N)."""
    tn_cands = [t for t in _aligned_divisors_desc(N, 128) if t <= 4096] or [N]
    r_cands = _aligned_divisors_desc(R, 8) or [R]

    def footprint(r, t):
        return 2 * (r * t * 2 + r * t * 4 + 2 * r * 4)

    best = None
    for t in tn_cands:
        for r in r_cands:
            if footprint(r, t) > budget:
                continue
            cand = (r * t, t, r)
            if best is None or cand > best:
                best = cand
    if best is not None:
        return best[2], best[1]
    return min(r_cands), min(tn_cands)


# ---------------- Pallas kernels ----------------

def _gk_fused_kernel(x_ref, g_ref, wT_ref, y_ref, stats_ref):
    # pre=False: y_b^T = W^T @ (x_b @ g_b^T), fused with per-block BN partials.
    # x_ref: [Bblk, C_in, N] f32   g_ref: [Bblk, tm, N] f32
    # wT_ref: [C_out, C_in] f32    y_ref: [Bblk, C_out, tm] bf16
    # stats_ref: [1, 1, 2, C_out] f32   (lane axis = channels)
    wT = wT_ref[...]
    c_out = wT.shape[0]
    bblk = y_ref.shape[0]

    def body(b, carry):
        s1, s2 = carry
        xb = x_ref[b].astype(jnp.bfloat16)         # in-kernel cast, hides under MXU
        gb = g_ref[b].astype(jnp.bfloat16)
        # u = x_b @ g_b^T -> [C_in, tm]; contraction over nodes as A @ B^T
        # (no in-kernel transpose), bf16 MXU with f32 accumulation.
        u = lax.dot_general(xb, gb, (((1,), (1,)), ((), ())),
                            preferred_element_type=jnp.float32)
        # y_b^T = W^T @ u -> [C_out, tm]; tiny inner dim, kept in f32.
        yb = jnp.dot(wT, u, preferred_element_type=jnp.float32)
        y_ref[b] = yb.astype(y_ref.dtype)
        return (s1 + jnp.sum(yb, axis=1), s2 + jnp.sum(yb * yb, axis=1))

    init = (jnp.zeros((c_out,), jnp.float32), jnp.zeros((c_out,), jnp.float32))
    s1, s2 = lax.fori_loop(0, bblk, body, init)
    stats_ref[0, 0, 0, :] = s1
    stats_ref[0, 0, 1, :] = s2


def _gk_pre_stats_kernel(g_ref, wT_ref, stats_ref):
    # pre=True pass A: statistics only; y is never written to HBM.
    # g_ref: [Bblk, tm, C_in] f32   wT_ref: [C_out, C_in] bf16
    wT = wT_ref[...]
    c_out = wT.shape[0]
    bblk = g_ref.shape[0]

    def body(b, carry):
        s1, s2 = carry
        gb = g_ref[b].astype(jnp.bfloat16)
        yb = lax.dot_general(wT, gb, (((1,), (1,)), ((), ())),
                             preferred_element_type=jnp.float32)   # [C_out, tm]
        return (s1 + jnp.sum(yb, axis=1), s2 + jnp.sum(yb * yb, axis=1))

    init = (jnp.zeros((c_out,), jnp.float32), jnp.zeros((c_out,), jnp.float32))
    s1, s2 = lax.fori_loop(0, bblk, body, init)
    stats_ref[0, 0, 0, :] = s1
    stats_ref[0, 0, 1, :] = s2


def _gk_pre_apply_kernel(g_ref, wT_ref, scale_ref, shift_ref, o_ref):
    # pre=True pass B: recompute the cheap small-K matmul per tile and apply
    # BN+ReLU in place; writes the final output directly (lane axis = nodes).
    wT = wT_ref[...]
    scale = scale_ref[...]          # [C_out, 1]
    shift = shift_ref[...]

    @pl.loop(0, g_ref.shape[0])
    def _(b):
        gb = g_ref[b].astype(jnp.bfloat16)
        yb = lax.dot_general(wT, gb, (((1,), (1,)), ((), ())),
                             preferred_element_type=jnp.float32)   # [C_out, tm]
        o_ref[b] = jnp.maximum(yb * scale + shift, 0.0)


def _bn_apply_relu_kernel(y_ref, scale_ref, shift_ref, o_ref):
    # Elementwise BN+ReLU over a flattened (rows, N) view; per-row scale/shift.
    y = y_ref[...].astype(jnp.float32)
    o_ref[...] = jnp.maximum(y * scale_ref[...] + shift_ref[...], 0.0)


# ---------------- BN statistics combine ----------------

def _bn_affine(stats, gamma, beta, count):
    # Tiny O(C_out) combine of per-block partial sums (each grid step wrote a
    # disjoint stats block -> megacore-safe with all-parallel semantics).
    s = jnp.sum(stats, axis=(0, 1))                     # [2, C_out]
    cnt = jnp.float32(count)
    mean = s[0] / cnt
    var = jnp.maximum(s[1] / cnt - mean * mean, 0.0)    # biased batch variance
    inv = lax.rsqrt(var + jnp.float32(_EPS))
    scale = gamma * inv
    shift = beta - mean * scale
    return scale, shift


# ---------------- wrapper ----------------

def graph_kernel_forward(x, g, kernel, gamma, beta, pre):
    """x: [B, C_in, N, 1], g: [B, N, K, 1] (K=N or C_in), kernel: [C_in, C_out].
    Returns [B, C_out, N, 1] (matches the PyTorch module output layout)."""
    C_in, C_out = kernel.shape
    g3 = jnp.squeeze(g, axis=-1)                        # [B, N, K] f32
    B, N = g3.shape[0], g3.shape[1]

    cap = _vmem_capacity_bytes()
    budget = cap // 2                                    # double-buffered footprint
    cparams = pltpu.CompilerParams(
        dimension_semantics=("parallel", "parallel"),
        vmem_limit_bytes=int(cap * 0.85))

    gamma_f = gamma.astype(jnp.float32)
    beta_f = beta.astype(jnp.float32)

    if pre:
        wT = jnp.transpose(kernel).astype(jnp.bfloat16)  # [C_out, C_in], tiny
        bblk, tm = _pick_tiling_pre_true(B, C_in, C_out, N, budget)
        nb, nm = B // bblk, N // tm

        g_spec = pl.BlockSpec((bblk, tm, C_in), lambda bb, mm: (bb, mm, 0))
        w_spec = pl.BlockSpec((C_out, C_in), lambda bb, mm: (0, 0))
        stats_spec = pl.BlockSpec((1, 1, 2, C_out), lambda bb, mm: (bb, mm, 0, 0))

        stats = pl.pallas_call(
            _gk_pre_stats_kernel,
            out_shape=jax.ShapeDtypeStruct((nb, nm, 2, C_out), jnp.float32),
            grid=(nb, nm),
            in_specs=[g_spec, w_spec],
            out_specs=stats_spec,
            compiler_params=cparams,
        )(g3, wT)

        scale, shift = _bn_affine(stats, gamma_f, beta_f, B * N)
        scale2 = scale.reshape(C_out, 1)
        shift2 = shift.reshape(C_out, 1)
        sc_spec = pl.BlockSpec((C_out, 1), lambda bb, mm: (0, 0))

        out = pl.pallas_call(
            _gk_pre_apply_kernel,
            out_shape=jax.ShapeDtypeStruct((B, C_out, N), jnp.float32),
            grid=(nb, nm),
            in_specs=[g_spec, w_spec, sc_spec, sc_spec],
            out_specs=pl.BlockSpec((bblk, C_out, tm), lambda bb, mm: (bb, 0, mm)),
            compiler_params=cparams,
        )(g3, wT, scale2, shift2)
        return out[..., None]

    # ---- pre == False ----
    x3 = jnp.squeeze(x, axis=-1)                        # [B, C_in, N] f32 (no cast)
    wT = jnp.transpose(kernel).astype(jnp.float32)      # [C_out, C_in], tiny
    bblk, tm = _pick_tiling_pre_false(B, C_in, C_out, N, budget)
    nb, nm = B // bblk, N // tm

    x_spec = pl.BlockSpec((bblk, C_in, N), lambda bb, mm: (bb, 0, 0))
    g_spec = pl.BlockSpec((bblk, tm, N), lambda bb, mm: (bb, mm, 0))
    w_spec = pl.BlockSpec((C_out, C_in), lambda bb, mm: (0, 0))
    y_spec = pl.BlockSpec((bblk, C_out, tm), lambda bb, mm: (bb, 0, mm))
    stats_spec = pl.BlockSpec((1, 1, 2, C_out), lambda bb, mm: (bb, mm, 0, 0))

    y, stats = pl.pallas_call(
        _gk_fused_kernel,
        out_shape=(jax.ShapeDtypeStruct((B, C_out, N), jnp.bfloat16),
                   jax.ShapeDtypeStruct((nb, nm, 2, C_out), jnp.float32)),
        grid=(nb, nm),
        in_specs=[x_spec, g_spec, w_spec],
        out_specs=(y_spec, stats_spec),
        compiler_params=cparams,
    )(x3, g3, wT)

    scale, shift = _bn_affine(stats, gamma_f, beta_f, B * N)

    # Pass 2: independent lane-dense elementwise BN+ReLU on the flattened y.
    R = B * C_out
    y2 = y.reshape(R, N)                                # free major-dim merge
    scale_rows = jnp.tile(scale, B).reshape(R, 1)       # per-(batch,channel) row
    shift_rows = jnp.tile(shift, B).reshape(R, 1)
    rblk, tn = _pick_tiling_apply(R, N, budget)

    out2 = pl.pallas_call(
        _bn_apply_relu_kernel,
        out_shape=jax.ShapeDtypeStruct((R, N), jnp.float32),
        grid=(R // rblk, N // tn),
        in_specs=[pl.BlockSpec((rblk, tn), lambda r, c: (r, c)),
                  pl.BlockSpec((rblk, 1), lambda r, c: (r, 0)),
                  pl.BlockSpec((rblk, 1), lambda r, c: (r, 0))],
        out_specs=pl.BlockSpec((rblk, tn), lambda r, c: (r, c)),
        compiler_params=cparams,
    )(y2, scale_rows, shift_rows)

    # [B, C_out, N] -> [B, C_out, N, 1]: pure reshape, no transpose round trip.
    return out2.reshape(B, C_out, N)[..., None]


# ---------------- pure-JAX reference (silent correctness check) ----------------

def _reference(x, g, kernel, gamma, beta, pre):
    # Mirrors the kernel's mixed precision: inputs quantized to bf16 before the
    # MXU, f32 accumulation, BN stats from the f32 product; pre=False also
    # rounds the stored y intermediate to bf16 before BN-apply.
    g3 = jnp.squeeze(g, axis=-1).astype(jnp.bfloat16).astype(jnp.float32)
    if pre:
        w = kernel.astype(jnp.bfloat16).astype(jnp.float32)
        y = jnp.einsum('bnk,ko->bno', g3, w)
        y_apply = y
    else:
        x3 = jnp.squeeze(x, axis=-1).astype(jnp.bfloat16).astype(jnp.float32)
        t = jnp.einsum('bnm,bcm->bnc', g3, x3)                   # g @ x^T
        y = jnp.einsum('bnc,co->bno', t, kernel.astype(jnp.float32))
        y_apply = y.astype(jnp.bfloat16).astype(jnp.float32)
    mean = jnp.mean(y, axis=(0, 1), keepdims=True)
    var = jnp.mean((y - mean) ** 2, axis=(0, 1), keepdims=True)
    inv = 1.0 / jnp.sqrt(var + _EPS)
    out = (y_apply - mean) * inv * gamma.reshape(1, 1, -1) + beta.reshape(1, 1, -1)
    out = jnp.maximum(out, 0.0)
    return jnp.transpose(out, (0, 2, 1))[..., None]


if __name__ == "__main__":
    B, C_in, C_out, N = 2, 4, 8, 16
    key = jax.random.PRNGKey(0)
    k_x, k_g, k_w = jax.random.split(key, 3)

    # inputs in PyTorch layout
    x = jax.random.normal(k_x, (B, C_in, N, 1), dtype=jnp.float32)   # [B, C_in, N, 1]
    g = jax.random.normal(k_g, (B, N, N, 1), dtype=jnp.float32)      # [B, N, N, 1]

    # deterministic parameters (xavier-normal scale for kernel, BN defaults)
    xavier_std = float(np.sqrt(2.0 / (C_in + C_out)))
    kernel = jax.random.normal(k_w, (C_in, C_out), dtype=jnp.float32) * xavier_std
    gamma = jnp.ones((C_out,), dtype=jnp.float32)
    beta = jnp.zeros((C_out,), dtype=jnp.float32)

    fwd = jax.jit(graph_kernel_forward, static_argnames=("pre",))

    # pre=False path (the two-bmm hot path)
    out = jax.block_until_ready(fwd(x, g, kernel, gamma, beta, pre=False))
    ref = _reference(x, g, kernel, gamma, beta, pre=False)
    assert out.shape == (B, C_out, N, 1)
    assert np.allclose(np.asarray(out), np.asarray(ref), rtol=1e-2, atol=1e-2)

    # pre=True path (g directly [B, N, C_in, 1])
    g_pre = jax.random.normal(jax.random.PRNGKey(1), (B, N, C_in, 1), dtype=jnp.float32)
    out_pre = jax.block_until_ready(fwd(x, g_pre, kernel, gamma, beta, pre=True))
    ref_pre = _reference(x, g_pre, kernel, gamma, beta, pre=True)
    assert out_pre.shape == (B, C_out, N, 1)
    assert np.allclose(np.asarray(out_pre), np.asarray(ref_pre), rtol=1e-2, atol=1e-2)

    print("KERNEL_OK")
</pallas_src>

<mosaic_0001>
module attributes {stable_mosaic.version = 11 : i64} {
  func.func @_gk_fused_kernel(%arg0: i32, %arg1: i32, %arg2: memref<2x4x16xf32, #tpu.memory_space<vmem>>, %arg3: memref<2x16x16xf32, #tpu.memory_space<vmem>>, %arg4: memref<8x4xf32, #tpu.memory_space<vmem>>, %arg5: memref<2x8x16xbf16, #tpu.memory_space<vmem>>, %arg6: memref<1x1x2x8xf32, #tpu.memory_space<vmem>>) attributes {dimension_semantics = [#tpu.dimension_semantics<parallel>, #tpu.dimension_semantics<parallel>], iteration_bounds = array<i64: 1, 1>, scalar_prefetch = 0 : i64, scratch_operands = 0 : i64, tpu.core_type = #tpu.core_type<tc>, window_params = [{transform_indices = @transform_0, window_bounds = array<i64: 2, 4, 16>}, {transform_indices = @transform_1, window_bounds = array<i64: 2, 16, 16>}, {pipeline_mode = #tpu.pipeline_mode<synchronous>, transform_indices = @transform_2, window_bounds = array<i64: 8, 4>}, {transform_indices = @transform_3, window_bounds = array<i64: 2, 8, 16>}, {transform_indices = @transform_4, window_bounds = array<i64: 1, 1, 2, 8>}]} {
    %c0 = arith.constant 0 : index
    %c0_0 = arith.constant 0 : index
    %0 = vector.load %arg4[%c0, %c0_0] : memref<8x4xf32, #tpu.memory_space<vmem>>, vector<8x4xf32>
    %cst = arith.constant 0.000000e+00 : f32
    %1 = vector.broadcast %cst : f32 to vector<8xf32>
    %cst_1 = arith.constant 0.000000e+00 : f32
    %2 = vector.broadcast %cst_1 : f32 to vector<8xf32>
    %c0_i32 = arith.constant 0 : i32
    %c2_i32 = arith.constant 2 : i32
    %3 = arith.addi %c0_i32, %c2_i32 : i32
    %c1_i32 = arith.constant 1 : i32
    %4:2 = scf.for %arg7 = %c0_i32 to %3 step %c1_i32 iter_args(%arg8 = %1, %arg9 = %2) -> (vector<8xf32>, vector<8xf32>)  : i32 {
      %11 = arith.index_cast %arg7 : i32 to index
      %c0_10 = arith.constant 0 : index
      %c0_11 = arith.constant 0 : index
      %12 = vector.load %arg2[%11, %c0_10, %c0_11] : memref<2x4x16xf32, #tpu.memory_space<vmem>>, vector<1x4x16xf32>
      %13 = vector.shape_cast %12 : vector<1x4x16xf32> to vector<4x16xf32>
      %14 = arith.truncf %13 : vector<4x16xf32> to vector<4x16xbf16>
      %15 = arith.index_cast %arg7 : i32 to index
      %c0_12 = arith.constant 0 : index
      %c0_13 = arith.constant 0 : index
      %16 = vector.load %arg3[%15, %c0_12, %c0_13] : memref<2x16x16xf32, #tpu.memory_space<vmem>>, vector<1x16x16xf32>
      %17 = vector.shape_cast %16 : vector<1x16x16xf32> to vector<16x16xf32>
      %18 = arith.truncf %17 : vector<16x16xf32> to vector<16x16xbf16>
      %cst_14 = arith.constant dense<0.000000e+00> : vector<4x16xf32>
      %19 = tpu.matmul %14, %18, %cst_14 {dimension_numbers = #tpu.dot_dimension_numbers<[1], [1], [0], [0], [0, 0, 1, 0], [], []>} : vector<4x16xbf16>, vector<16x16xbf16>, vector<4x16xf32> -> vector<4x16xf32>
      %cst_15 = arith.constant dense<0.000000e+00> : vector<8x16xf32>
      %20 = tpu.matmul %0, %19, %cst_15 {dimension_numbers = #tpu.dot_dimension_numbers<[1], [0], [0], [1], [0, 0, 1, 1], [], []>} : vector<8x4xf32>, vector<4x16xf32>, vector<8x16xf32> -> vector<8x16xf32>
      %21 = arith.truncf %20 : vector<8x16xf32> to vector<8x16xbf16>
      %22 = arith.index_cast %arg7 : i32 to index
      %c0_16 = arith.constant 0 : index
      %c0_17 = arith.constant 0 : index
      %23 = vector.load %arg5[%22, %c0_16, %c0_17] : memref<2x8x16xbf16, #tpu.memory_space<vmem>>, vector<1x8x16xbf16>
      %24 = vector.shape_cast %23 : vector<1x8x16xbf16> to vector<8x16xbf16>
      %25 = vector.shape_cast %21 : vector<8x16xbf16> to vector<1x8x16xbf16>
      tpu.vector_store %arg5[%22, %c0_16, %c0_17], %25 {strides = array<i32>} : memref<2x8x16xbf16, #tpu.memory_space<vmem>>, vector<1x8x16xbf16>,
      %cst_18 = arith.constant dense<0.000000e+00> : vector<8xf32>
      %26 = vector.multi_reduction <add>, %20, %cst_18 [1] : vector<8x16xf32> to vector<8xf32>
      %27 = arith.addf %arg8, %26 : vector<8xf32>
      %28 = arith.mulf %20, %20 : vector<8x16xf32>
      %cst_19 = arith.constant dense<0.000000e+00> : vector<8xf32>
      %29 = vector.multi_reduction <add>, %28, %cst_19 [1] : vector<8x16xf32> to vector<8xf32>
      %30 = arith.addf %arg9, %29 : vector<8xf32>
      scf.yield %27, %30 : vector<8xf32>, vector<8xf32>
    }
    %c2_i32_2 = arith.constant 2 : i32
    %c0_3 = arith.constant 0 : index
    %c0_4 = arith.constant 0 : index
    %c0_5 = arith.constant 0 : index
    %c0_6 = arith.constant 0 : index
    %5 = vector.load %arg6[%c0_3, %c0_4, %c0_5, %c0_6] : memref<1x1x2x8xf32, #tpu.memory_space<vmem>>, vector<1x1x1x8xf32>
    %6 = vector.shape_cast %5 : vector<1x1x1x8xf32> to vector<8xf32>
    %7 = vector.shape_cast %4#0 : vector<8xf32> to vector<1x1x1x8xf32>
    tpu.vector_store %arg6[%c0_3, %c0_4, %c0_5, %c0_6], %7 {strides = array<i32>} : memref<1x1x2x8xf32, #tpu.memory_space<vmem>>, vector<1x1x1x8xf32>,
    %c0_7 = arith.constant 0 : index
    %c0_8 = arith.constant 0 : index
    %c1 = arith.constant 1 : index
    %c0_9 = arith.constant 0 : index
    %8 = vector.load %arg6[%c0_7, %c0_8, %c1, %c0_9] : memref<1x1x2x8xf32, #tpu.memory_space<vmem>>, vector<1x1x1x8xf32>
    %9 = vector.shape_cast %8 : vector<1x1x1x8xf32> to vector<8xf32>
    %10 = vector.shape_cast %4#1 : vector<8xf32> to vector<1x1x1x8xf32>
    tpu.vector_store %arg6[%c0_7, %c0_8, %c1, %c0_9], %10 {strides = array<i32>} : memref<1x1x2x8xf32, #tpu.memory_space<vmem>>, vector<1x1x1x8xf32>,
    return
  }
  func.func @transform_0(%arg0: i32, %arg1: i32) -> (i32, i32, i32) {
    %c0_i32 = arith.constant 0 : i32
    %c0_i32_0 = arith.constant 0 : i32
    %c0_i32_1 = arith.constant 0 : i32
    return %arg0, %c0_i32, %c0_i32_0 : i32, i32, i32
  }
  func.func @transform_1(%arg0: i32, %arg1: i32) -> (i32, i32, i32) {
    %c0_i32 = arith.constant 0 : i32
    %c0_i32_0 = arith.constant 0 : i32
    return %arg0, %arg1, %c0_i32 : i32, i32, i32
  }
  func.func @transform_2(%arg0: i32, %arg1: i32) -> (i32, i32) {
    %c0_i32 = arith.constant 0 : i32
    %c0_i32_0 = arith.constant 0 : i32
    %c0_i32_1 = arith.constant 0 : i32
    return %c0_i32, %c0_i32_0 : i32, i32
  }
  func.func @transform_3(%arg0: i32, %arg1: i32) -> (i32, i32, i32) {
    %c0_i32 = arith.constant 0 : i32
    %c0_i32_0 = arith.constant 0 : i32
    return %arg0, %c0_i32, %arg1 : i32, i32, i32
  }
  func.func @transform_4(%arg0: i32, %arg1: i32) -> (i32, i32, i32, i32) {
    %c0_i32 = arith.constant 0 : i32
    %c0_i32_0 = arith.constant 0 : i32
    %c0_i32_1 = arith.constant 0 : i32
    return %arg0, %arg1, %c0_i32, %c0_i32_0 : i32, i32, i32, i32
  }
}

module attributes {stable_mosaic.version = 11 : i64} {
  func.func @_bn_apply_relu_kernel(%arg0: i32, %arg1: i32, %arg2: memref<16x16xbf16, #tpu.memory_space<vmem>>, %arg3: memref<16x1xf32, #tpu.memory_space<vmem>>, %arg4: memref<16x1xf32, #tpu.memory_space<vmem>>, %arg5: memref<16x16xf32, #tpu.memory_space<vmem>>) attributes {dimension_semantics = [#tpu.dimension_semantics<parallel>, #tpu.dimension_semantics<parallel>], iteration_bounds = array<i64: 1, 1>, scalar_prefetch = 0 : i64, scratch_operands = 0 : i64, tpu.core_type = #tpu.core_type<tc>, window_params = [{transform_indices = @transform_0, window_bounds = array<i64: 16, 16>}, {transform_indices = @transform_1, window_bounds = array<i64: 16, 1>}, {transform_indices = @transform_2, window_bounds = array<i64: 16, 1>}, {transform_indices = @transform_3, window_bounds = array<i64: 16, 16>}]} {
    %c0 = arith.constant 0 : index
    %c0_0 = arith.constant 0 : index
    %0 = vector.load %arg2[%c0, %c0_0] : memref<16x16xbf16, #tpu.memory_space<vmem>>, vector<16x16xbf16>
    %1 = arith.extf %0 : vector<16x16xbf16> to vector<16x16xf32>
    %c0_1 = arith.constant 0 : index
    %c0_2 = arith.constant 0 : index
    %2 = vector.load %arg3[%c0_1, %c0_2] : memref<16x1xf32, #tpu.memory_space<vmem>>, vector<16x1xf32>
    %3 = vector.broadcast %2 : vector<16x1xf32> to vector<16x16xf32>
    %4 = arith.mulf %1, %3 : vector<16x16xf32>
    %c0_3 = arith.constant 0 : index
    %c0_4 = arith.constant 0 : index
    %5 = vector.load %arg4[%c0_3, %c0_4] : memref<16x1xf32, #tpu.memory_space<vmem>>, vector<16x1xf32>
    %6 = vector.broadcast %5 : vector<16x1xf32> to vector<16x16xf32>
    %7 = arith.addf %4, %6 : vector<16x16xf32>
    %cst = arith.constant 0.000000e+00 : f32
    %8 = vector.broadcast %cst : f32 to vector<16x16xf32>
    %9 = arith.maximumf %7, %8 : vector<16x16xf32>
    %c0_5 = arith.constant 0 : index
    %c0_6 = arith.constant 0 : index
    %10 = vector.load %arg5[%c0_5, %c0_6] : memref<16x16xf32, #tpu.memory_space<vmem>>, vector<16x16xf32>
    tpu.vector_store %arg5[%c0_5, %c0_6], %9 {strides = array<i32>} : memref<16x16xf32, #tpu.memory_space<vmem>>, vector<16x16xf32>,
    return
  }
  func.func @transform_0(%arg0: i32, %arg1: i32) -> (i32, i32) {
    %c0_i32 = arith.constant 0 : i32
    return %arg0, %arg1 : i32, i32
  }
  func.func @transform_1(%arg0: i32, %arg1: i32) -> (i32, i32) {
    %c0_i32 = arith.constant 0 : i32
    %c0_i32_0 = arith.constant 0 : i32
    return %arg0, %c0_i32 : i32, i32
  }
  func.func @transform_2(%arg0: i32, %arg1: i32) -> (i32, i32) {
    %c0_i32 = arith.constant 0 : i32
    %c0_i32_0 = arith.constant 0 : i32
    return %arg0, %c0_i32 : i32, i32
  }
  func.func @transform_3(%arg0: i32, %arg1: i32) -> (i32, i32) {
    %c0_i32 = arith.constant 0 : i32
    return %arg0, %arg1 : i32, i32
  }
}

</mosaic_0001>

<bundles_post_ra>
// kernel: tile.18
= control target key start
LH: loop header
LB: loop body
LE: loop exit
PB: predicated region body
PF: predicated region fallthrough
CT: control target
= control target key end

     0   :  { %s22_s0 = inlined_call_operand.vmem [shape: f32[8], index: 0, kind: input, shape index: {}]   ;;  %s23_s1 = inlined_call_operand.vmem [shape: f32[2,8], index: 1, kind: output, shape index: {}]  }
   0x1   :  { %v4_v0 = vld [vmem:[%s22_s0] ss:$0 sm:$0xff] }
   0x2   :  { %5 = vst [vmem:[%s23_s1] sm:$0x3] %v4_v0 }

// kernel: tile.0
= control target key start
LH: loop header
LB: loop body
LE: loop exit
PB: predicated region body
PF: predicated region fallthrough
CT: control target
= control target key end

     0   :  { %s66_s8 = smov 125   ;;  %vm7_vm0 = vcmask 7168   ;;  %s67_s11 = smov 126   ;;  %s117_s0 = inlined_call_operand.vmem [shape: f32[2,8], index: 0, kind: input, shape index: {}]   ;;  %s118_s1 = inlined_call_operand.vmem [shape: f32[16,1], index: 1, kind: output, shape index: {}]  }
   0x1   :  { %v4_v0 = vld [vmem:[%s117_s0] sm:$0x3]  ;;  %s65_s0 = smov 127   ;;  %s68_s12 = smov 124  }
   0x2   :  { %5 = vst [vmem:[#allocation0] sm:$0x3] %v4_v0  ;;  %s69_s13 = smov 123   ;;  %s70_s14 = smov 122  }
   0x3   :  { %s71_s15 = smov 121  }
   0x9   :  { %v9_v1 = vld [vmem:[#allocation0] sm:$0x3]  }
   0xa   :  { %v21_v2 = vld [vmem:[#allocation0] sm:$0x3]   ;;  %10 = vrot.lane.b32.xlu0 %v9_v1, %s65_s0 }
   0xb   :  { %22 = vrot.lane.b32.xlu1 %v21_v2, %s66_s8  ;;  %v15_v3 = vld [vmem:[#allocation0] sm:$0x3]  }
   0xc   :  { %v27_v4 = vld [vmem:[#allocation0] sm:$0x3]  }
   0xd   :  { %v6_v5 = vld [vmem:[#allocation0] sm:$0x3]  }
   0xe   :  { %8 = vst.msk [vmem:[%s118_s1] ss:$8 sm:$0x3] %vm7_vm0, %v6_v5   ;;  %16 = vrot.lane.b32.xlu0 %v15_v3, %s67_s11  ;;  %v33_v6 = vld [vmem:[#allocation0] sm:$0x3]  }
   0xf   :  { %28 = vrot.lane.b32.xlu1 %v27_v4, %s68_s12  ;;  %v39_v7 = vld [vmem:[#allocation0] sm:$0x3]  }
  0x10   :  { %v45_v8 = vld [vmem:[#allocation0] sm:$0x3]  }
  0x12   :  { %34 = vrot.lane.b32.xlu0 %v33_v6, %s69_s13 }
  0x13   :  { %40 = vrot.lane.b32.xlu1 %v39_v7, %s70_s14 }
  0x16   :  { %46 = vrot.lane.b32.xlu0 %v45_v8, %s71_s15 }
  0x7c   :  { %v11_v9 = vpop.permute.xlu0 %10  }
  0x7d   :  { %v23_v10 = vpop.permute.xlu1 %22   ;;  %51 = vst.msk [vmem:[%s118_s1 + $0x1] ss:$8 sm:$0x3] %vm7_vm0, %v11_v9  }
  0x7e   :  { %53 = vst.msk [vmem:[%s118_s1 + $0x3] ss:$8 sm:$0x3] %vm7_vm0, %v23_v10  }
  0x80   :  { %v17_v11 = vpop.permute.xlu0 %16  }
  0x81   :  { %v29_v12 = vpop.permute.xlu1 %28   ;;  %52 = vst.msk [vmem:[%s118_s1 + $0x2] ss:$8 sm:$0x3] %vm7_vm0, %v17_v11  }
  0x82   :  { %54 = vst.msk [vmem:[%s118_s1 + $0x4] ss:$8 sm:$0x3] %vm7_vm0, %v29_v12  }
  0x84   :  { %v35_v13 = vpop.permute.xlu0 %34  }
  0x85   :  { %v41_v14 = vpop.permute.xlu1 %40   ;;  %55 = vst.msk [vmem:[%s118_s1 + $0x5] ss:$8 sm:$0x3] %vm7_vm0, %v35_v13  }
  0x86   :  { %56 = vst.msk [vmem:[%s118_s1 + $0x6] ss:$8 sm:$0x3] %vm7_vm0, %v41_v14  }
  0x88   :  { %v47_v15 = vpop.permute.xlu0 %46  }
  0x89   :  { %57 = vst.msk [vmem:[%s118_s1 + $0x7] ss:$8 sm:$0x3] %vm7_vm0, %v47_v15  }

// kernel: graph_kernel_forward.3
= control target key start
LH: loop header
LB: loop body
LE: loop exit
PB: predicated region body
PF: predicated region fallthrough
CT: control target
= control target key end

     0   :  { %v102_v2 = vmov 0   ;;  %s153_s0 = inlined_call_operand.vmem [shape: bf16[16,16], index: 0, kind: input, shape index: {}]   ;;  %s154_s1 = inlined_call_operand.vmem [shape: f32[16,1], index: 1, kind: input, shape index: {}]   ;;  %s155_s2 = inlined_call_operand.vmem [shape: f32[16,1], index: 2, kind: input, shape index: {}]   ;;  %s156_s3 = inlined_call_operand.hbm [shape: f32[16,16], index: 3, kind: output, shape index: {}]  }
   0x1   :  { %v33_v0 = vld [vmem:[%s155_s2] sm:$0xff]  ;;  %77 = vset.pattern.permute.xlu1 %v102_v2  ;;  %76 = vset.pattern.permute.xlu0 %v102_v2 }
   0x2   :  { %v19_v1 = vld [vmem:[%s154_s1] sm:$0xff] }
   0x3   :  { %8 = vsyncpa [#allocation3], 0  ;;  %37 = vperm.xlu1 %77, %v33_v0   ;;  %23 = vperm.xlu0 %76, %v19_v1   ;;  %v34_v3 = vld [vmem:[%s155_s2 + $0x8] sm:$0xff]  ;;  %v69_v5 = vld [vmem:[%s153_s0] sm:$0xff]   ;;  %vm49_vm0 = vcmask 130048   ;;  %s103_s2 = smov [#allocation2]  }
   0x4   :  { %v20_v4 = vld [vmem:[%s154_s1 + $0x8] sm:$0xff]  ;;  %v70_v6 = vunpack.c.l.bf16 %v69_v5  ;;  %v71_v10 = vunpack.c.h.bf16 %v69_v5  ;;  %s57_s22 = sshll.u32 %s103_s2, 4  ;;  %s58_s22 = int_to_ptr.vmem [resolvable:$true] %s57_s22 }
   0x5   :  { %s78_s1 = scalar_lea.vmem %s58_s22, 256  ;;  %p83_p1 = scmp.lt.s32.totalorder %s58_s22, %s58_s22 }
   0x6   :  { %p79_p0 = scmp.ne.s32.totalorder %s58_s22, %s78_s1  ;;  %p84_p2 = scmp.lt.s32.totalorder %s78_s1, %s78_s1 }
   0x7   :  { %42 = vperm.xlu1 %77, %v34_v3   ;;  %28 = vperm.xlu0 %76, %v20_v4  }
   0x8   :  { %p85_p3 = por %p84_p2, %p83_p1 }
   0xa   :  { %p86_p4 = pnand %p85_p3, %p79_p0 }
  0x82   :  { %v38_v7 = vpop.permute.xlu1 %37  ;;  %v24_v8 = vpop.permute.xlu0 %23 }
  0x83   :  { %v31_v9 = vmul.f32 %v70_v6, %v24_v8 }
  0x85   :  { %v45_v11 = vadd.f32 %v38_v7, %v31_v9 }
  0x86   :  { %v29_v12 = vpop.permute.xlu0 %28  ;;  %v43_v15 = vpop.permute.xlu1 %42 }
  0x87   :  { %v47_v13 = vmax.f32 %v45_v11, 0.0  ;;  %v32_v14 = vmul.f32 %v71_v10, %v29_v12 }
  0x89   :  { %50 = vst.msk [vmem:[#allocation2] sm:$0xff] %vm49_vm0, %v47_v13  ;;  %v46_v16 = vadd.f32 %v43_v15, %v32_v14 }
  0x8b   :  { %v48_v17 = vmax.f32 %v46_v16, 0.0 }
  0x8d   :  { %51 = vst.msk [vmem:[#allocation2 + $0x8] sm:$0xff] %vm49_vm0, %v48_v17 }
  0x8e   :  { %89 = shalt.err (!%p86_p4)
}
  0x8f   :  { %s90_s24 = scalar_lea.hbm %s156_s3, 256 }
  0x90   :  { %p91_p5 = scmp.ne.s32.totalorder %s156_s3, %s90_s24  ;;  %p94_p6 = scmp.lt.u32.totalorder %s90_s24, %s156_s3 }
  0x92   :  { %p96_p7 = pnand %p94_p6, %p91_p5 }
  0x94   :  { %99 = shalt.err (!%p96_p7)
}
  0x95   :  { %s104_s29 = smov 128   ;;  %s105_s30 = smov 8  }
  0x96   :  { %63 = dma.vmem_to_hbm [thread:$0]  %s58_s22, 256, %s156_s3, [#allocation3], %s104_s29, %s104_s29, %s105_s30  }
  0x97   :  { %100 = dma.done.wait [#allocation3], 256  }
  0x98   :  { %101 = vsyncadd [#allocation3], 4294967040 }
  0x99   :  { %67 = vsyncpa [#allocation3], 1 }

// kernel: graph_kernel_forward.2
= control target key start
LH: loop header
LB: loop body
LE: loop exit
PB: predicated region body
PF: predicated region fallthrough
CT: control target
= control target key end

     0   :  { %10 = vsyncpa [#allocation3], 0  ;;  %s329_s15 = smov [#allocation2]   ;;  %s400_s0 = inlined_call_operand.vmem [shape: f32[2,4,16], index: 0, kind: input, shape index: {}]   ;;  %s401_s1 = inlined_call_operand.hbm [shape: f32[2,16,16], index: 1, kind: input, shape index: {}]   ;;  %s402_s2 = inlined_call_operand.vmem [shape: f32[8,4], index: 2, kind: input, shape index: {}]   ;;  %s403_s3 = inlined_call_operand.vmem [shape: bf16[2,8,16], index: 3, kind: output, shape index: {0}]   ;;  %s404_s4 = inlined_call_operand.vmem [shape: f32[1,1,2,8], index: 4, kind: output, shape index: {1}]  }
   0x1   :  { %s18_s16 = sshll.u32 %s329_s15, 4  ;;  %s281_s19 = scalar_lea.hbm %s401_s1, 512  ;;  %s19_s16 = int_to_ptr.vmem [resolvable:$true] %s18_s16 }
   0x2   :  { %p282_p0 = scmp.ne.s32.totalorder %s401_s1, %s281_s19  ;;  %p285_p1 = scmp.lt.u32.totalorder %s281_s19, %s401_s1 }
   0x4   :  { %p287_p2 = pnand %p285_p1, %p282_p0 }
   0x6   :  { %290 = shalt.err (!%p287_p2)
}
   0x7   :  { %s291_s24 = scalar_lea.vmem %s19_s16, 512  ;;  %p296_p4 = scmp.lt.s32.totalorder %s19_s16, %s19_s16 }
   0x8   :  { %p292_p3 = scmp.ne.s32.totalorder %s19_s16, %s291_s24  ;;  %p297_p5 = scmp.lt.s32.totalorder %s291_s24, %s291_s24 }
   0xa   :  { %p298_p6 = por %p297_p5, %p296_p4 }
   0xc   :  { %p299_p7 = pnand %p298_p6, %p292_p3 }
   0xe   :  { %302 = shalt.err (!%p299_p7)
}
   0xf   :  { %s330_s25 = smov 128   ;;  %s331_s26 = smov 8  }
  0x10   :  { %24 = dma.hbm_to_vmem [thread:$0]  %s401_s1, 512, %s19_s16, [#allocation3], %s330_s25, %s330_s25, %s331_s26  }
  0x11   :  { %315 = dma.done.wait [#allocation3], 512  }
  0x12   :  { %316 = vsyncadd [#allocation3], 4294966784  ;;  %v31_v0 = vld [vmem:[%s402_s2] sm:$0xff]  ;;  %v317_v1 = vmov 0.0   ;;  %v321_v2 = vmov 0.0   ;;  %s374_s5 = smov 0  }
  0x13 LB: > { %v332_v3 = vmov 0.0   ;;  %vm333_vm0 = vmmov 0   ;;  %s231_s1 = sshll.u32 %s327_s5, 2  ;;  %s232_s6 = sshll.u32 %s327_s5, 4  ;;  %vm49_vm1 = vcmask 130048   ;;  %vm100_vm2 = vcmask 1043456   ;;  %s327_s5 = sphi %s374_s5, %s37_s5   ;;  %v323_v2 = vphi %v321_v2, %v322_v2   ;;  %v319_v1 = vphi %v317_v1, %v318_v1  }
  0x14   : > { %241 = vmatprep.subr.bf16.mxu0 %v332_v3  ;;  %243 = vmatprep.mubr.msk.bf16.mxu0 %vm333_vm0, %v332_v3  ;;  %s45_s2 = scalar_lea.vmem [#allocation2], %s232_s6  ;;  %s41_s9 = scalar_lea.vmem %s400_s0, %s231_s1  ;;  %vm96_vm3 = vcmask 31744   ;;  %vm177_vm4 = vcmask 125952  }
  0x15   : > { %247 = vmatprep.subr.mxu1 %v332_v3  ;;  %249 = vmatprep.mubr.msk.f32.mxu1 %vm333_vm0, %v332_v3  ;;  %v46_v4 = vld [vmem:[%s45_s2] sm:$0xff]  ;;  %v47_v5 = vld [vmem:[%s45_s2 + $0x8] sm:$0xff]  ;;  %s176_s12 = scalar_lea.vmem %s403_s3, %s231_s1  ;;  %s37_s5 = sadd.s32 1, %s327_s5  }
  0x16   : > { %v48_v6 = vpack.c.bf16 %v47_v5, %v46_v4  ;;  %v42_v8 = vld [vmem:[%s41_s9] sm:$0xf]  ;;  %p34_p8 = scmp.ge.s32.totalorder %s37_s5, 2  }
  0x17   : > { %v43_v9 = vpack.c.bf16 %v42_v8, %v42_v8  ;;  %v189_v24 = vlaneseq (%p34_p8)  ;;  %vm196_vm5 = vcmask (%p34_p8), 57344  }
  0x18   : > { %v54_v7 = vsel %vm49_vm1, %v48_v6, 0 }
  0x19   : > { %242 = vmatpush3.bf16.xpose.msra.mxu0 %v54_v7  ;;  %v190_v25 = vand.u32 (%p34_p8), 127, %v189_v24  ;;  %v192_v26 = vshrl.u32 (%p34_p8), %v189_v24, 7 }
  0x1b   :  { %v193_v27 = vsub.s32 (%p34_p8), %v190_v25, %v192_v26 }
  0x20   : > { %244 = vmatmul.mubr.msk.bf16.vlgmr.msra.gmra.mrb[0].mxu0 %vm49_vm1, %v43_v9 }
  0xf3   : > { %v90_v10 = vpop.f32.mrb[0].mxu0 }
  0xf4   : > { %v245_v11 = vpop.f32.mrb[1].mxu0  ;;  %248 = vmatpush3.msk.msra.mxu1 %vm100_vm2, %v90_v10 }
  0xf5   : > { %v93_v12 = vpop.f32.mrb[2].mxu0  ;;  %250 = vmatmul.mubr.msk.f32.vlgmr.msra.gmra.mrb[0].mxu1 %vm96_vm3, %v31_v0 }
  0xf6   : > { %v246_v13 = vpop.f32.mrb[3].mxu0 }
 0x1c8   : > { %v170_v14 = vpop.f32.mrb[0].mxu1 }
 0x1c9   : > { %v174_v15 = vpack.c.bf16 %v170_v14, %v170_v14  ;;  %v251_v16 = vpop.f32.mrb[1].mxu1  ;;  %v179_v17 = vsel %vm49_vm1, %v170_v14, 0.0  ;;  %v183_v18 = vmul.f32 %v170_v14, %v170_v14 }
 0x1ca   : > { %180 = vadd.xlane.f32.xlu0 %v179_v17 }
 0x1cb   : > { %178 = vst.msk [vmem:[%s176_s12] sm:$0xf] %vm177_vm4, %v174_v15  ;;  %v184_v19 = vsel %vm49_vm1, %v183_v18, 0.0 }
 0x1ce   : > { %185 = vadd.xlane.f32.xlu0 %v184_v19 }
 0x257   : > { %v181_v20 = vpop.xlane.xlu0 %180 }
 0x258   : > { %v182_v21 = vadd.f32 %v323_v2, %v181_v20   ;;  %36 = sbr.rel (!%p34_p8) target bundleno = 19 (0x13), region = 54 }
 0x25a   : > { %v322_v2 = vmov %v182_v21   ;;  %v194_v28 = vrot.slane (%p34_p8), %v182_v21, %v193_v27 }
 0x25b   : > { %v186_v22 = vpop.xlane.xlu0 %185 }
 0x25c   : > { %v187_v23 = vadd.f32 %v319_v1, %v186_v22   ;;  %197 = vst.msk [vmem:[%s404_s4] sm:$0x1] (%p34_p8), %vm196_vm5, %v194_v28 }
 0x25e   : > { %v318_v1 = vmov %v187_v23   ;;  %v202_v29 = vrot.slane (%p34_p8), %v187_v23, %v193_v27 }
 0x260   :  { %204 = vst.msk [vmem:[%s404_s4 + $0x1] sm:$0x1] %vm196_vm5, %v202_v29 }
 0x261   :  { %213 = vsyncpa [#allocation3], 1 }

</bundles_post_ra>
